<compile_context>
chip_gen: v6e
topology: v6e:2x2x1
jax: 0.10.0
libtpu: 0.0.40
codegen_flags: <defaults>
</compile_context>

<pallas_src>
import functools

import jax
import jax.numpy as jnp
from jax import lax
from jax.experimental import pallas as pl
from jax.experimental.pallas import tpu as pltpu

K = 3         # conv kernel size (kernel_size=3 in the module)
EPS = 1e-5
_REF_PREC = lax.Precision.HIGHEST   # reference only; kernel matmuls use bf16 operands


def sideways_conv_kernel(x_ref, w1_ref, w2_ref, wr_ref, pvec_ref, mask_ref,
                         out_ref, pad_ref, *, H, W):
    # x_ref:    (1, Cin, H*W + 2)  bf16  flattened NCHW input (+2 junk cols for the last tap)
    # w1_ref:   (Cout, K*K*Cin)    bf16  conv1 weights, im2col layout (tap-major, chan-minor)
    # w2_ref:   (Cout, K*K*Cout)   bf16  conv2 weights, im2col layout
    # wr_ref:   (Cout, Cin)        bf16  residual 1x1 conv
    # pvec_ref: (Cout, 5)          f32   packed [s1, t1, s2, t2, br] (conv bias + BN folded)
    # mask_ref: (1, H1*W)          f32   1.0 on real output columns, 0.0 on junk columns
    # out_ref:  (1, Cout, H1*W)    f32
    # pad_ref:  (Cout, H*W + 2)    bf16  scratch: zero-padded conv2 input (padding=1)
    H1 = H - (K - 1)
    npix = H1 * W                   # flattened output pixels (incl. W-W1 junk cols per row)
    hwp = pad_ref.shape[1]          # H*W + 2
    Cout = out_ref.shape[1]

    s1 = pvec_ref[:, 0:1]
    t1 = pvec_ref[:, 1:2]
    s2 = pvec_ref[:, 2:3]
    t2 = pvec_ref[:, 3:4]
    br = pvec_ref[:, 4:5]
    mask = mask_ref[...]            # (1, npix)

    # ---- conv1: 3x3 VALID as ONE im2col matmul on the MXU (bf16 in, f32 acc) ----
    p1 = jnp.concatenate(
        [x_ref[0, :, i * W + j: i * W + j + npix]
         for i in range(K) for j in range(K)], axis=0)              # (K*K*Cin, npix)
    acc1 = jnp.dot(w1_ref[...], p1,
                   preferred_element_type=jnp.float32)              # (Cout, npix)

    # fused conv bias + BatchNorm(inference) + ReLU; Dropout = eval-mode identity.
    # Junk columns are zeroed so they become the zero halo of the padded conv2 input.
    a1 = jnp.maximum(acc1 * s1 + t1, 0.0) * mask                     # (Cout, npix) f32

    # ---- build the zero-padded conv2 input in a persistent VMEM scratch ----
    # padded spatial = (H1+2, W1+2) = (H, W): flattened, it is a1 shifted by W+1 lanes,
    # with the masked junk columns landing exactly on the left/right halo positions.
    edge = jnp.zeros((Cout, W + 1), pad_ref.dtype)
    pad_ref[:, :W + 1] = edge                       # top halo row + left halo of row 1
    pad_ref[:, W + 1 + npix:hwp] = edge             # rest of bottom halo row (+2 spare cols)
    pad_ref[:, W + 1:W + 1 + npix] = a1.astype(pad_ref.dtype)

    # ---- conv2: 3x3 padding=1 == 3x3 VALID on the padded scratch, again ONE matmul ----
    p2 = jnp.concatenate(
        [pad_ref[:, i * W + j: i * W + j + npix]
         for i in range(K) for j in range(K)], axis=0)              # (K*K*Cout, npix)
    acc2 = jnp.dot(w2_ref[...], p2,
                   preferred_element_type=jnp.float32)              # (Cout, npix)
    z = jnp.maximum(acc2 * s2 + t2, 0.0)

    # ---- residual: 1x1 conv on the (top-left cropped) input ----
    res = jnp.dot(wr_ref[...], x_ref[0, :, :npix],
                  preferred_element_type=jnp.float32) + br

    out_ref[0] = (z + res).astype(out_ref.dtype)


def sideways_conv_forward(x_nchw, p):
    """x_nchw: (N, Cin, H, W) float32, PyTorch layout. Returns (N, Cout, H-2, W-2)."""
    N, Cin, H, W = x_nchw.shape
    Cout = p["w1"].shape[3]
    H1, W1 = H - (K - 1), W - (K - 1)
    npix = H1 * W
    hwp = H * W + 2

    # flatten spatial (free for contiguous NCHW) + 2 junk columns so the last im2col
    # tap slice stays in bounds; cast to bf16 (matmul operand dtype, halves x DMA).
    xf = jnp.pad(x_nchw.reshape(N, Cin, H * W), ((0, 0), (0, 0), (0, 2)))
    xf = xf.astype(jnp.bfloat16)

    # im2col weight layouts: (Cout, K*K*C), tap-major, channel-minor.
    w1m = jnp.transpose(p["w1"], (3, 0, 1, 2)).reshape(Cout, K * K * Cin).astype(jnp.bfloat16)
    w2m = jnp.transpose(p["w2"], (3, 0, 1, 2)).reshape(Cout, K * K * Cout).astype(jnp.bfloat16)
    wrm = p["wr"].T.astype(jnp.bfloat16)                                   # (Cout, Cin)

    # Fold conv bias + BN running stats into per-channel scale/shift; pack the five
    # per-channel vectors into ONE (Cout, 5) array -> a single tiny DMA.
    s1 = p["g1"] / jnp.sqrt(p["v1"] + EPS)
    t1 = (p["b1"] - p["m1"]) * s1 + p["beta1"]
    s2 = p["g2"] / jnp.sqrt(p["v2"] + EPS)
    t2 = (p["b2"] - p["m2"]) * s2 + p["beta2"]
    pvec = jnp.stack([s1, t1, s2, t2, p["br"]], axis=1).astype(jnp.float32)

    # 1.0 on real output columns, 0.0 on the W-W1 wrap-around junk columns of each row.
    colmask = ((jnp.arange(npix) % W) < W1).astype(jnp.float32).reshape(1, npix)

    out_flat = pl.pallas_call(
        functools.partial(sideways_conv_kernel, H=H, W=W),
        out_shape=jax.ShapeDtypeStruct((N, Cout, npix), jnp.float32),
        grid=(N,),
        in_specs=[
            pl.BlockSpec((1, Cin, hwp), lambda n: (n, 0, 0)),        # x (per-batch block)
            pl.BlockSpec((Cout, K * K * Cin), lambda n: (0, 0)),     # w1 (im2col layout)
            pl.BlockSpec((Cout, K * K * Cout), lambda n: (0, 0)),    # w2 (im2col layout)
            pl.BlockSpec((Cout, Cin), lambda n: (0, 0)),             # wr
            pl.BlockSpec((Cout, 5), lambda n: (0, 0)),               # packed scale/shift/bias
            pl.BlockSpec((1, npix), lambda n: (0, 0)),               # column mask
        ],
        out_specs=pl.BlockSpec((1, Cout, npix), lambda n: (n, 0, 0)),
        scratch_shapes=[pltpu.VMEM((Cout, hwp), jnp.bfloat16)],      # padded conv2 input
        compiler_params=pltpu.CompilerParams(dimension_semantics=("parallel",)),
    )(xf, w1m, w2m, wrm, pvec, colmask)

    # drop the junk columns: (N, Cout, H1*W) -> (N, Cout, H1, W) -> crop to W1.
    return out_flat.reshape(N, Cout, H1, W)[:, :, :, :W1]


def reference_forward(x_nchw, p):
    """Plain-JAX reference matching the PyTorch module in eval mode (f32, HIGHEST)."""
    x = jnp.transpose(x_nchw, (0, 2, 3, 1)).astype(jnp.float32)
    dn = ('NHWC', 'HWIO', 'NHWC')
    y = lax.conv_general_dilated(x, p["w1"], (1, 1), 'VALID',
                                 dimension_numbers=dn, precision=_REF_PREC) + p["b1"]
    y = (y - p["m1"]) / jnp.sqrt(p["v1"] + EPS) * p["g1"] + p["beta1"]
    y = jnp.maximum(y, 0.0)
    y = lax.conv_general_dilated(y, p["w2"], (1, 1), ((1, 1), (1, 1)),
                                 dimension_numbers=dn, precision=_REF_PREC) + p["b2"]
    y = (y - p["m2"]) / jnp.sqrt(p["v2"] + EPS) * p["g2"] + p["beta2"]
    y = jnp.maximum(y, 0.0)
    res = jnp.einsum('nhwc,cd->nhwd', x, p["wr"], precision=_REF_PREC) + p["br"]
    H1, W1 = y.shape[1], y.shape[2]
    out = y + res[:, :H1, :W1, :]
    return jnp.transpose(out, (0, 3, 1, 2))


def init_params(key, in_chan, out_chan):
    ks = jax.random.split(key, 16)
    n = lambda i, shape, scale=0.1: scale * jax.random.normal(ks[i], shape, jnp.float32)
    return {
        # conv1
        "w1": n(0, (K, K, in_chan, out_chan), 0.2), "b1": n(1, (out_chan,)),
        "g1": 1.0 + n(2, (out_chan,)), "beta1": n(3, (out_chan,)),
        "m1": n(4, (out_chan,)), "v1": 1.0 + jnp.abs(n(5, (out_chan,))),
        # conv2
        "w2": n(6, (K, K, out_chan, out_chan), 0.2), "b2": n(7, (out_chan,)),
        "g2": 1.0 + n(8, (out_chan,)), "beta2": n(9, (out_chan,)),
        "m2": n(10, (out_chan,)), "v2": 1.0 + jnp.abs(n(11, (out_chan,))),
        # residual 1x1 conv
        "wr": n(12, (in_chan, out_chan), 0.3), "br": n(13, (out_chan,)),
    }


if __name__ == "__main__":
    key = jax.random.PRNGKey(0)
    kx, kp = jax.random.split(key)

    N, Cin, Cout, H, W = 2, 4, 4, 16, 16
    x = jax.random.normal(kx, (N, Cin, H, W), jnp.float32)   # NCHW, like PyTorch
    params = init_params(kp, Cin, Cout)

    out = jax.block_until_ready(sideways_conv_forward(x, params))
    ref = jax.block_until_ready(reference_forward(x, params))

    assert out.shape == (N, Cout, H - 2, W - 2), out.shape
    err = float(jnp.max(jnp.abs(out - ref)))
    # Kernel matmuls use bf16 MXU operands (per perf review) while the reference is
    # f32/HIGHEST, so the tolerance is revalidated to bf16-operand level.
    if not (err < 5e-2):
        raise AssertionError(f"kernel/reference mismatch: max abs err = {err}")
    print("KERNEL_OK")
</pallas_src>

<mosaic_0001>
module attributes {stable_mosaic.version = 11 : i64} {
  func.func @sideways_conv_kernel(%arg0: i32, %arg1: memref<1x4x258xbf16, #tpu.memory_space<vmem>>, %arg2: memref<4x36xbf16, #tpu.memory_space<vmem>>, %arg3: memref<4x36xbf16, #tpu.memory_space<vmem>>, %arg4: memref<4x4xbf16, #tpu.memory_space<vmem>>, %arg5: memref<4x5xf32, #tpu.memory_space<vmem>>, %arg6: memref<1x224xf32, #tpu.memory_space<vmem>>, %arg7: memref<1x4x224xf32, #tpu.memory_space<vmem>>, %arg8: memref<4x258xbf16, #tpu.memory_space<vmem>>) attributes {dimension_semantics = [#tpu.dimension_semantics<parallel>], iteration_bounds = array<i64: 2>, scalar_prefetch = 0 : i64, scratch_operands = 1 : i64, tpu.core_type = #tpu.core_type<tc>, window_params = [{transform_indices = @transform_0, window_bounds = array<i64: 1, 4, 258>}, {pipeline_mode = #tpu.pipeline_mode<synchronous>, transform_indices = @transform_1, window_bounds = array<i64: 4, 36>}, {pipeline_mode = #tpu.pipeline_mode<synchronous>, transform_indices = @transform_2, window_bounds = array<i64: 4, 36>}, {pipeline_mode = #tpu.pipeline_mode<synchronous>, transform_indices = @transform_3, window_bounds = array<i64: 4, 4>}, {pipeline_mode = #tpu.pipeline_mode<synchronous>, transform_indices = @transform_4, window_bounds = array<i64: 4, 5>}, {pipeline_mode = #tpu.pipeline_mode<synchronous>, transform_indices = @transform_5, window_bounds = array<i64: 1, 224>}, {transform_indices = @transform_6, window_bounds = array<i64: 1, 4, 224>}]} {
    %c0 = arith.constant 0 : index
    %c0_0 = arith.constant 0 : index
    %0 = vector.load %arg5[%c0, %c0_0] : memref<4x5xf32, #tpu.memory_space<vmem>>, vector<4x1xf32>
    %c0_1 = arith.constant 0 : index
    %c1 = arith.constant 1 : index
    %1 = vector.load %arg5[%c0_1, %c1] : memref<4x5xf32, #tpu.memory_space<vmem>>, vector<4x1xf32>
    %c0_2 = arith.constant 0 : index
    %c2 = arith.constant 2 : index
    %2 = vector.load %arg5[%c0_2, %c2] : memref<4x5xf32, #tpu.memory_space<vmem>>, vector<4x1xf32>
    %c0_3 = arith.constant 0 : index
    %c3 = arith.constant 3 : index
    %3 = vector.load %arg5[%c0_3, %c3] : memref<4x5xf32, #tpu.memory_space<vmem>>, vector<4x1xf32>
    %c0_4 = arith.constant 0 : index
    %c4 = arith.constant 4 : index
    %4 = vector.load %arg5[%c0_4, %c4] : memref<4x5xf32, #tpu.memory_space<vmem>>, vector<4x1xf32>
    %c0_5 = arith.constant 0 : index
    %c0_6 = arith.constant 0 : index
    %5 = vector.load %arg6[%c0_5, %c0_6] : memref<1x224xf32, #tpu.memory_space<vmem>>, vector<1x224xf32>
    %c0_7 = arith.constant 0 : index
    %c0_8 = arith.constant 0 : index
    %c0_9 = arith.constant 0 : index
    %6 = vector.load %arg1[%c0_7, %c0_8, %c0_9] : memref<1x4x258xbf16, #tpu.memory_space<vmem>>, vector<1x4x224xbf16>
    %7 = vector.shape_cast %6 : vector<1x4x224xbf16> to vector<4x224xbf16>
    %c0_10 = arith.constant 0 : index
    %c0_11 = arith.constant 0 : index
    %c1_12 = arith.constant 1 : index
    %8 = vector.load %arg1[%c0_10, %c0_11, %c1_12] : memref<1x4x258xbf16, #tpu.memory_space<vmem>>, vector<1x4x224xbf16>
    %9 = vector.shape_cast %8 : vector<1x4x224xbf16> to vector<4x224xbf16>
    %c0_13 = arith.constant 0 : index
    %c0_14 = arith.constant 0 : index
    %c2_15 = arith.constant 2 : index
    %10 = vector.load %arg1[%c0_13, %c0_14, %c2_15] : memref<1x4x258xbf16, #tpu.memory_space<vmem>>, vector<1x4x224xbf16>
    %11 = vector.shape_cast %10 : vector<1x4x224xbf16> to vector<4x224xbf16>
    %c0_16 = arith.constant 0 : index
    %c0_17 = arith.constant 0 : index
    %c16 = arith.constant 16 : index
    %12 = vector.load %arg1[%c0_16, %c0_17, %c16] : memref<1x4x258xbf16, #tpu.memory_space<vmem>>, vector<1x4x224xbf16>
    %13 = vector.shape_cast %12 : vector<1x4x224xbf16> to vector<4x224xbf16>
    %c0_18 = arith.constant 0 : index
    %c0_19 = arith.constant 0 : index
    %c17 = arith.constant 17 : index
    %14 = vector.load %arg1[%c0_18, %c0_19, %c17] : memref<1x4x258xbf16, #tpu.memory_space<vmem>>, vector<1x4x224xbf16>
    %15 = vector.shape_cast %14 : vector<1x4x224xbf16> to vector<4x224xbf16>
    %c0_20 = arith.constant 0 : index
    %c0_21 = arith.constant 0 : index
    %c18 = arith.constant 18 : index
    %16 = vector.load %arg1[%c0_20, %c0_21, %c18] : memref<1x4x258xbf16, #tpu.memory_space<vmem>>, vector<1x4x224xbf16>
    %17 = vector.shape_cast %16 : vector<1x4x224xbf16> to vector<4x224xbf16>
    %c0_22 = arith.constant 0 : index
    %c0_23 = arith.constant 0 : index
    %c32 = arith.constant 32 : index
    %18 = vector.load %arg1[%c0_22, %c0_23, %c32] : memref<1x4x258xbf16, #tpu.memory_space<vmem>>, vector<1x4x224xbf16>
    %19 = vector.shape_cast %18 : vector<1x4x224xbf16> to vector<4x224xbf16>
    %c0_24 = arith.constant 0 : index
    %c0_25 = arith.constant 0 : index
    %c33 = arith.constant 33 : index
    %20 = vector.load %arg1[%c0_24, %c0_25, %c33] : memref<1x4x258xbf16, #tpu.memory_space<vmem>>, vector<1x4x224xbf16>
    %21 = vector.shape_cast %20 : vector<1x4x224xbf16> to vector<4x224xbf16>
    %c0_26 = arith.constant 0 : index
    %c0_27 = arith.constant 0 : index
    %c34 = arith.constant 34 : index
    %22 = vector.load %arg1[%c0_26, %c0_27, %c34] : memref<1x4x258xbf16, #tpu.memory_space<vmem>>, vector<1x4x224xbf16>
    %23 = vector.shape_cast %22 : vector<1x4x224xbf16> to vector<4x224xbf16>
    %24 = tpu.concatenate %7, %9, %11, %13, %15, %17, %19, %21, %23 in 0 : vector<4x224xbf16>, vector<4x224xbf16>, vector<4x224xbf16>, vector<4x224xbf16>, vector<4x224xbf16>, vector<4x224xbf16>, vector<4x224xbf16>, vector<4x224xbf16>, vector<4x224xbf16> -> vector<36x224xbf16>
    %c0_28 = arith.constant 0 : index
    %c0_29 = arith.constant 0 : index
    %25 = vector.load %arg2[%c0_28, %c0_29] : memref<4x36xbf16, #tpu.memory_space<vmem>>, vector<4x36xbf16>
    %cst = arith.constant dense<0.000000e+00> : vector<4x224xf32>
    %26 = tpu.matmul %25, %24, %cst {dimension_numbers = #tpu.dot_dimension_numbers<[1], [0], [0], [1], [0, 0, 1, 1], [], []>} : vector<4x36xbf16>, vector<36x224xbf16>, vector<4x224xf32> -> vector<4x224xf32>
    %27 = vector.broadcast %0 : vector<4x1xf32> to vector<4x224xf32>
    %28 = arith.mulf %26, %27 : vector<4x224xf32>
    %29 = vector.broadcast %1 : vector<4x1xf32> to vector<4x224xf32>
    %30 = arith.addf %28, %29 : vector<4x224xf32>
    %cst_30 = arith.constant 0.000000e+00 : f32
    %31 = vector.broadcast %cst_30 : f32 to vector<4x224xf32>
    %32 = arith.maximumf %30, %31 : vector<4x224xf32>
    %33 = vector.broadcast %5 : vector<1x224xf32> to vector<4x224xf32>
    %34 = arith.mulf %32, %33 : vector<4x224xf32>
    %cst_31 = arith.constant 0.000000e+00 : bf16
    %35 = vector.broadcast %cst_31 : bf16 to vector<4x17xbf16>
    %c0_32 = arith.constant 0 : index
    %c0_33 = arith.constant 0 : index
    %36 = vector.load %arg8[%c0_32, %c0_33] : memref<4x258xbf16, #tpu.memory_space<vmem>>, vector<4x17xbf16>
    tpu.vector_store %arg8[%c0_32, %c0_33], %35 {strides = array<i32>} : memref<4x258xbf16, #tpu.memory_space<vmem>>, vector<4x17xbf16>,
    %c0_34 = arith.constant 0 : index
    %c241 = arith.constant 241 : index
    %37 = vector.load %arg8[%c0_34, %c241] : memref<4x258xbf16, #tpu.memory_space<vmem>>, vector<4x17xbf16>
    tpu.vector_store %arg8[%c0_34, %c241], %35 {strides = array<i32>} : memref<4x258xbf16, #tpu.memory_space<vmem>>, vector<4x17xbf16>,
    %38 = arith.truncf %34 : vector<4x224xf32> to vector<4x224xbf16>
    %c0_35 = arith.constant 0 : index
    %c17_36 = arith.constant 17 : index
    %39 = vector.load %arg8[%c0_35, %c17_36] : memref<4x258xbf16, #tpu.memory_space<vmem>>, vector<4x224xbf16>
    tpu.vector_store %arg8[%c0_35, %c17_36], %38 {strides = array<i32>} : memref<4x258xbf16, #tpu.memory_space<vmem>>, vector<4x224xbf16>,
    %c0_37 = arith.constant 0 : index
    %c0_38 = arith.constant 0 : index
    %40 = vector.load %arg8[%c0_37, %c0_38] : memref<4x258xbf16, #tpu.memory_space<vmem>>, vector<4x224xbf16>
    %c0_39 = arith.constant 0 : index
    %c1_40 = arith.constant 1 : index
    %41 = vector.load %arg8[%c0_39, %c1_40] : memref<4x258xbf16, #tpu.memory_space<vmem>>, vector<4x224xbf16>
    %c0_41 = arith.constant 0 : index
    %c2_42 = arith.constant 2 : index
    %42 = vector.load %arg8[%c0_41, %c2_42] : memref<4x258xbf16, #tpu.memory_space<vmem>>, vector<4x224xbf16>
    %c0_43 = arith.constant 0 : index
    %c16_44 = arith.constant 16 : index
    %43 = vector.load %arg8[%c0_43, %c16_44] : memref<4x258xbf16, #tpu.memory_space<vmem>>, vector<4x224xbf16>
    %c0_45 = arith.constant 0 : index
    %c17_46 = arith.constant 17 : index
    %44 = vector.load %arg8[%c0_45, %c17_46] : memref<4x258xbf16, #tpu.memory_space<vmem>>, vector<4x224xbf16>
    %c0_47 = arith.constant 0 : index
    %c18_48 = arith.constant 18 : index
    %45 = vector.load %arg8[%c0_47, %c18_48] : memref<4x258xbf16, #tpu.memory_space<vmem>>, vector<4x224xbf16>
    %c0_49 = arith.constant 0 : index
    %c32_50 = arith.constant 32 : index
    %46 = vector.load %arg8[%c0_49, %c32_50] : memref<4x258xbf16, #tpu.memory_space<vmem>>, vector<4x224xbf16>
    %c0_51 = arith.constant 0 : index
    %c33_52 = arith.constant 33 : index
    %47 = vector.load %arg8[%c0_51, %c33_52] : memref<4x258xbf16, #tpu.memory_space<vmem>>, vector<4x224xbf16>
    %c0_53 = arith.constant 0 : index
    %c34_54 = arith.constant 34 : index
    %48 = vector.load %arg8[%c0_53, %c34_54] : memref<4x258xbf16, #tpu.memory_space<vmem>>, vector<4x224xbf16>
    %49 = tpu.concatenate %40, %41, %42, %43, %44, %45, %46, %47, %48 in 0 : vector<4x224xbf16>, vector<4x224xbf16>, vector<4x224xbf16>, vector<4x224xbf16>, vector<4x224xbf16>, vector<4x224xbf16>, vector<4x224xbf16>, vector<4x224xbf16>, vector<4x224xbf16> -> vector<36x224xbf16>
    %c0_55 = arith.constant 0 : index
    %c0_56 = arith.constant 0 : index
    %50 = vector.load %arg3[%c0_55, %c0_56] : memref<4x36xbf16, #tpu.memory_space<vmem>>, vector<4x36xbf16>
    %cst_57 = arith.constant dense<0.000000e+00> : vector<4x224xf32>
    %51 = tpu.matmul %50, %49, %cst_57 {dimension_numbers = #tpu.dot_dimension_numbers<[1], [0], [0], [1], [0, 0, 1, 1], [], []>} : vector<4x36xbf16>, vector<36x224xbf16>, vector<4x224xf32> -> vector<4x224xf32>
    %52 = vector.broadcast %2 : vector<4x1xf32> to vector<4x224xf32>
    %53 = arith.mulf %51, %52 : vector<4x224xf32>
    %54 = vector.broadcast %3 : vector<4x1xf32> to vector<4x224xf32>
    %55 = arith.addf %53, %54 : vector<4x224xf32>
    %cst_58 = arith.constant 0.000000e+00 : f32
    %56 = vector.broadcast %cst_58 : f32 to vector<4x224xf32>
    %57 = arith.maximumf %55, %56 : vector<4x224xf32>
    %c0_59 = arith.constant 0 : index
    %c0_60 = arith.constant 0 : index
    %58 = vector.load %arg4[%c0_59, %c0_60] : memref<4x4xbf16, #tpu.memory_space<vmem>>, vector<4x4xbf16>
    %c0_61 = arith.constant 0 : index
    %c0_62 = arith.constant 0 : index
    %c0_63 = arith.constant 0 : index
    %59 = vector.load %arg1[%c0_61, %c0_62, %c0_63] : memref<1x4x258xbf16, #tpu.memory_space<vmem>>, vector<1x4x224xbf16>
    %60 = vector.shape_cast %59 : vector<1x4x224xbf16> to vector<4x224xbf16>
    %cst_64 = arith.constant dense<0.000000e+00> : vector<4x224xf32>
    %61 = tpu.matmul %58, %60, %cst_64 {dimension_numbers = #tpu.dot_dimension_numbers<[1], [0], [0], [1], [0, 0, 1, 1], [], []>} : vector<4x4xbf16>, vector<4x224xbf16>, vector<4x224xf32> -> vector<4x224xf32>
    %62 = vector.broadcast %4 : vector<4x1xf32> to vector<4x224xf32>
    %63 = arith.addf %61, %62 : vector<4x224xf32>
    %64 = arith.addf %57, %63 : vector<4x224xf32>
    %c0_65 = arith.constant 0 : index
    %c0_66 = arith.constant 0 : index
    %c0_67 = arith.constant 0 : index
    %65 = vector.load %arg7[%c0_65, %c0_66, %c0_67] : memref<1x4x224xf32, #tpu.memory_space<vmem>>, vector<1x4x224xf32>
    %66 = vector.shape_cast %65 : vector<1x4x224xf32> to vector<4x224xf32>
    %67 = vector.shape_cast %64 : vector<4x224xf32> to vector<1x4x224xf32>
    tpu.vector_store %arg7[%c0_65, %c0_66, %c0_67], %67 {strides = array<i32>} : memref<1x4x224xf32, #tpu.memory_space<vmem>>, vector<1x4x224xf32>,
    return
  }
  func.func @transform_0(%arg0: i32) -> (i32, i32, i32) {
    %c0_i32 = arith.constant 0 : i32
    %c0_i32_0 = arith.constant 0 : i32
    %c0_i32_1 = arith.constant 0 : i32
    return %arg0, %c0_i32, %c0_i32_0 : i32, i32, i32
  }
  func.func @transform_1(%arg0: i32) -> (i32, i32) {
    %c0_i32 = arith.constant 0 : i32
    %c0_i32_0 = arith.constant 0 : i32
    %c0_i32_1 = arith.constant 0 : i32
    return %c0_i32, %c0_i32_0 : i32, i32
  }
  func.func @transform_2(%arg0: i32) -> (i32, i32) {
    %c0_i32 = arith.constant 0 : i32
    %c0_i32_0 = arith.constant 0 : i32
    %c0_i32_1 = arith.constant 0 : i32
    return %c0_i32, %c0_i32_0 : i32, i32
  }
  func.func @transform_3(%arg0: i32) -> (i32, i32) {
    %c0_i32 = arith.constant 0 : i32
    %c0_i32_0 = arith.constant 0 : i32
    %c0_i32_1 = arith.constant 0 : i32
    return %c0_i32, %c0_i32_0 : i32, i32
  }
  func.func @transform_4(%arg0: i32) -> (i32, i32) {
    %c0_i32 = arith.constant 0 : i32
    %c0_i32_0 = arith.constant 0 : i32
    %c0_i32_1 = arith.constant 0 : i32
    return %c0_i32, %c0_i32_0 : i32, i32
  }
  func.func @transform_5(%arg0: i32) -> (i32, i32) {
    %c0_i32 = arith.constant 0 : i32
    %c0_i32_0 = arith.constant 0 : i32
    %c0_i32_1 = arith.constant 0 : i32
    return %c0_i32, %c0_i32_0 : i32, i32
  }
  func.func @transform_6(%arg0: i32) -> (i32, i32, i32) {
    %c0_i32 = arith.constant 0 : i32
    %c0_i32_0 = arith.constant 0 : i32
    %c0_i32_1 = arith.constant 0 : i32
    return %arg0, %c0_i32, %c0_i32_0 : i32, i32, i32
  }
}

</mosaic_0001>

<bundles_post_ra>
// kernel: tpu_custom_call.1
= control target key start
LH: loop header
LB: loop body
LE: loop exit
PB: predicated region body
PF: predicated region fallthrough
CT: control target
= control target key end

     0   :  { %s1566_s0 = inlined_call_operand.hbm [shape: bf16[2,4,258], index: 0, kind: input, shape index: {}]   ;;  %s1567_s1 = inlined_call_operand.hbm [shape: bf16[4,36], index: 1, kind: input, shape index: {}]   ;;  %s1568_s2 = inlined_call_operand.vmem [shape: bf16[4,36], index: 2, kind: input, shape index: {}]   ;;  %s1569_s3 = inlined_call_operand.hbm [shape: bf16[4,4], index: 3, kind: input, shape index: {}]   ;;  %s1570_s4 = inlined_call_operand.vmem [shape: f32[4,5], index: 4, kind: input, shape index: {}]   ;;  %s1571_s5 = inlined_call_operand.vmem [shape: f32[1,224], index: 5, kind: input, shape index: {}]   ;;  %s1572_s6 = inlined_call_operand.hbm [shape: f32[2,4,224], index: 6, kind: output, shape index: {}]  }
   0x1   :  { %1577 = sst [smem:[#allocation13_spill]] %s1567_s1 }
   0x2   :  { %11 = vsyncpa [#allocation4], 0 }
   0x3   :  { %13 = vsyncpa [#allocation4 + $0x1], 0 }
   0x4   :  { %14 = vsyncpa [#allocation7], 0 }
   0x5   :  { %15 = vsyncpa [#allocation5], 0 }
   0x6   :  { %17 = vsyncpa [#allocation5 + $0x1], 0  ;;  %s1238_s21 = smov 0   ;;  %s1240_s22 = smov 0  }
   0x7   :  { %s1242_s23 = smov 0   ;;  %s1244_s24 = smov 0  }
   0x8 LB: > { %s1259_s25 = sadd.s32 4294967295, %s1182_s24   ;;  %s913_s26 = sadd.s32 4294967294, %s1182_s24   ;;  %s1182_s24 = sphi %s1244_s24, %s1596_s24   ;;  %s1178_s23 = sphi %s1242_s23, %s1595_s23   ;;  %s1174_s22 = sphi %s1240_s22, %s1594_s22   ;;  %s1170_s21 = sphi %s1238_s21, %s1593_s21  }
   0x9   : > { %p43_p0 = scmp.ne.s32.totalorder %s1174_s22, %s1170_s21  ;;  %p1573_p1 = scmp.eq.s32.totalorder %s1259_s25, 0 }
   0xa   : > { %p178_p3 = scmp.eq.s32.totalorder %s913_s26, 1  ;;  %p914_p5 = scmp.ge.s32.totalorder %s1182_s24, 1 }
   0xb   : > { %p1268_p4 = por %p1573_p1, %p43_p0  ;;  %p185_p7 = scmp.lt.s32.totalorder %s1182_s24, 3 }
   0xc   : > { %p1273_p6 = por %p178_p3, %p43_p0  ;;  %s1184_s30 = smov [#allocation6]  }
   0xd   : > { %s1578_s27 = scalar_select %p1268_p4, 1, 0 }
   0xe   : > { %s1579_s28 = scalar_select %p1273_p6, 1, 0 }
   0xf   : > { %p1278_p8 = pnand %p914_p5, %p185_p7  ;;  %s198_s7 = sshll.u32 %s1184_s30, 4  ;;  %s199_s7 = int_to_ptr.vmem [resolvable:$true] %s198_s7 }
  0x10   : > { %s1185_s8 = smov [#allocation8]   ;;  %s1292_s11 = sadd.s32 1, %s1182_s24  }
  0x11   : > { %s1580_s29 = scalar_select %p1278_p8, 1, 0 }
  0x12   : > { %p952_p10 = pneg %p1278_p8  ;;  %s212_s9 = sshll.u32 %s1185_s8, 4  ;;  %s213_s9 = int_to_ptr.vmem [resolvable:$true] %s212_s9 }
  0x13   : > { %s27_s12 = ssub.s32 %s1182_s24, %s1292_s11  ;;  %s1045_s13 = scalar_lea.vmem %s199_s7, 32 }
  0x14   : > { %p1287_p11 = pnand %p952_p10, %p1573_p1  ;;  %p1046_p13 = scmp.ne.s32.totalorder %s199_s7, %s1045_s13 }
  0x15   : > { %p1053_p5 = scmp.lt.s32.totalorder %s199_s7, %s199_s7  ;;  %p1054_p7 = scmp.lt.s32.totalorder %s1045_s13, %s1045_s13 }
  0x16   : > { %p1036_p12 = pneg %p1287_p11 }
  0x17   : > { %p1055_p10 = por %p1054_p7, %p1053_p5 }
  0x18   : > { %p1048_p0 = pnand %p1046_p13, %p1036_p12 }
  0x1a   : > { %p1049_p3 = pneg %p1048_p0 }
  0x1c   : > { %p1056_p9 = pnand %p1055_p10, %p1049_p3 }
  0x1e   : > { %1059 = shalt.err (!%p1056_p9)
}
  0x1f   : > { %s1582_s1 = sld [smem:[#allocation13_spill]]  ;;  %s1071_s16 = scalar_lea.vmem %s213_s9, 32 }
  0x20   : > { %p1072_p1 = scmp.ne.s32.totalorder %s213_s9, %s1071_s16  ;;  %p1079_p13 = scmp.lt.s32.totalorder %s213_s9, %s213_s9 }
  0x21   : > { %p1080_p0 = scmp.lt.s32.totalorder %s1071_s16, %s1071_s16 }
  0x22   : > { %p1074_p2 = pnand %p1072_p1, %p1036_p12 }
  0x23   : > { %p1081_p4 = por %p1080_p0, %p1079_p13 }
  0x24   : > { %p1075_p6 = pneg %p1074_p2 }
  0x25   : > { %955 = dma.hbm_to_vmem [thread:$0]  (!%p1287_p11), %s1582_s1, 32, %s199_s7, [#allocation7]  }
  0x26   : > { %p1082_p8 = pnand %p1081_p4, %p1075_p6 }
  0x28   : > { %1085 = shalt.err (!%p1082_p8)
}
  0x29   : > { %958 = dma.hbm_to_vmem [thread:$0]  (!%p1287_p11), %s1569_s3, 32, %s213_s9, [#allocation7]  }
  0x2a   : > { %p28_p1 = scmp.eq.s32.totalorder %s27_s12, 0  ;;  %s30_s19 = sadd.s32 1, %s1178_s23 }
  0x2b   : > { %p37_p2 = scmp.ne.s32.totalorder %s1178_s23, %s1174_s22  ;;  %p38_p4 = scmp.eq.s32.totalorder %s1182_s24, 0 }
  0x2c   : > { %s1319_s20 = scalar_select %p28_p1, %s1178_s23, %s30_s19  }
  0x2d   : > { %p39_p6 = por %p38_p4, %p37_p2  ;;  %p1583_p8 = scmp.eq.s32.totalorder %s1259_s25, 1 }
  0x2e   : > { %p969_p12 = scmp.lt.s32.totalorder %s1182_s24, 2  ;;  %s229_s30 = sand.u32 1, %s1178_s23  }
  0x2f   : > { %p1323_p9 = por %p1583_p8, %p37_p2  ;;  %s937_s7 = smul.u32 6, %s229_s30 }
  0x30   : > { %s938_s8 = smul.u32 96, %s1182_s24  ;;  %p1330_p3 = pnand %p969_p12, %p39_p6 }
  0x31   : > { %s1584_s26 = scalar_select %p1323_p9, 1, 0 }
  0x32   : > { %s1337_s13 = scalar_lea.hbm %s1566_s0, %s938_s8  ;;  %s233_s14 = scalar_lea.vmem [#allocation3], %s937_s7 }
  0x33   : > { %s241_s15 = sshll.u32 %s233_s14, 4  ;;  %s230_s16 = scalar_lea.sflag [#allocation4], %s229_s30  ;;  %s242_s15 = int_to_ptr.vmem [resolvable:$true] %s241_s15 }
  0x34   : > { %s1086_s17 = scalar_lea.hbm %s1337_s13, 96  ;;  %p1088_p5 = pneg %p1330_p3 }
  0x35   : > { %p1087_p11 = scmp.ne.s32.totalorder %s1337_s13, %s1086_s17  ;;  %s1091_s9 = scalar_lea.hbm %s1566_s0, 192 }
  0x36   : > { %p1092_p13 = scmp.lt.s32.totalorder %s1337_s13, %s1566_s0  ;;  %p1093_p0 = scmp.lt.s32.totalorder %s1091_s9, %s1086_s17 }
  0x37   : > { %p1089_p7 = pnand %p1088_p5, %p1087_p11 }
  0x38   : > { %p1094_p1 = por %p1093_p0, %p1092_p13 }
  0x39   : > { %p1090_p10 = pneg %p1089_p7 }
  0x3b   : > { %p1095_p2 = pnand %p1094_p1, %p1090_p10 }
  0x3d   : > { %1098 = shalt.err (!%p1095_p2)
}
  0x3e   : > { %s1099_s7 = scalar_lea.vmem %s242_s15, 96  ;;  %s1186_s30 = smov [#allocation3]  }
  0x3f   : > { %p1100_p4 = scmp.ne.s32.totalorder %s242_s15, %s1099_s7  ;;  %s1104_s14 = sshll.u32 %s1186_s30, 4  ;;  %s1105_s14 = int_to_ptr.vmem [resolvable:$false] %s1104_s14 }
  0x40   : > { %s1106_s1 = scalar_lea.vmem %s1105_s14, 192  ;;  %p1107_p12 = scmp.lt.s32.totalorder %s242_s15, %s1105_s14 }
  0x41   : > { %p1102_p6 = pnand %p1100_p4, %p1088_p5  ;;  %p1108_p11 = scmp.lt.s32.totalorder %s1106_s1, %s1099_s7 }
  0x43   : > { %p1103_p8 = pneg %p1102_p6  ;;  %p1109_p7 = por %p1108_p11, %p1107_p12 }
  0x45   : > { %p1110_p9 = pnand %p1109_p7, %p1103_p8 }
  0x47   : > { %1113 = shalt.err (!%p1110_p9)
}
  0x48   : > { %962 = dma.hbm_to_vmem [thread:$0]  (!%p1330_p3), %s1337_s13, 96, %s242_s15, %s230_s16  }
  0x49   : > { %p1586_p10 = scmp.ne.s32.totalorder %s1580_s29, 0 }
  0x4a   : > { %s1356_s17 = sand.u32 (!%p1586_p10), 1, %s1174_s22   ;;  %p1587_p5 = scmp.ne.s32.totalorder (!%p1586_p10), %s1578_s27, 0 }
  0x4b   : > { %250 = sbr.rel (%p1586_p10) target bundleno = 951 (0x3b7), region = 44  ;;  %s253_s19 = scalar_lea.sflag (!%p1586_p10), [#allocation4], %s1356_s17 }
  0x4c   : > { %s939_s18 = smul.u32 (!%p1586_p10), 6, %s1356_s17 }
  0x4e   : > { %s1360_s9 = scalar_lea.vmem (!%p1586_p10), [#allocation3], %s939_s18 }
  0x50   : > { %1157 = dma.done.wait (%p1587_p5), %s253_s19, 96  }
  0x51   : > { %1159 = vsyncadd (%p1587_p5), %s253_s19, 4294967200  ;;  %p1588_p9 = scmp.eq.s32.totalorder %s1259_s25, 0 }
  0x53   : > { %1161 = dma.done.wait (%p1588_p9), [#allocation7], 64   ;;  %p1589_p3 = pmov %p1588_p9 }
  0x54   : > { %v302_v0 = vlaneseq  ;;  %v1187_v1 = vmov 1983009808   ;;  %v297_v6 = vld [vmem:[%s1360_s9] sm:$0x3f]  ;;  %s1188_s1 = smov 94   ;;  %s1189_s27 = smov 111  }
  0x55   : > { %1163 = vsyncadd (%p1589_p3), [#allocation7], 4294967232  ;;  %v300_v2 = vunpack.c.l.s4 %v1187_v1  ;;  %v296_v7 = vld [vmem:[%s1360_s9] sm:$0xf]  ;;  %v381_v10 = vcombine.high %v297_v6, %v297_v6  ;;  %s1190_s29 = smov 110   ;;  %v355_v18 = vcombine.low %v297_v6, %v297_v6  ;;  %s1191_s10 = smov 96  }
  0x56   : > { %v1370_v3 = vshrl.u32 %v302_v0, 7  ;;  %v307_v13 = vcombine.low %v296_v7, %v296_v7  ;;  %s1192_s13 = smov 95   ;;  %v1193_v22 = vmov 0   ;;  %s1194_s15 = smov 127   ;;  %v1195_v23 = vmov 1  }
  0x57   : > { %v301_v4 = vunpack.c.0.s8 %v300_v2  ;;  %477 = vmatprep.mubr.bf16.mxu0 %v1193_v22  ;;  %1022 = vset.pattern.permute.xlu0 %v1193_v22  ;;  %s1196_s16 = smov 126   ;;  %s1197_s12 = smov 112   ;;  %v1418_v25 = vld [vmem:[%s1570_s4] sm:$0xf]  ;;  %vm396_vm0 = vcmask 769024   ;;  %vm399_vm1 = vcmask 1041408  }
  0x58   : > { %711 = vmatprep.mubr.bf16.mxu1 %v1193_v22  ;;  %1023 = vset.pattern.permute.xlu1 %v1195_v23  ;;  %vm346_vm2 = vcmask 900096   ;;  %vm352_vm3 = vcmask 785408   ;;  %vm340_vm4 = vcmask 908288   ;;  %vm406_vm5 = vcmask 1043456   ;;  %s1198_s18 = smov 17   ;;  %p1590_p0 = scmp.ne.s32.totalorder %s1584_s26, 0 }
  0x59   : > { %v1373_v5 = vsub.s32 %v301_v4, %v1370_v3  ;;  %vm378_vm6 = vcmask 777216   ;;  %vm411_vm7 = vcmask 1045504   ;;  %vm320_vm8 = vcmask 1039360   ;;  %v434_v4 = vld [vmem:[#allocation6] sm:$0x3] }
  0x5a   : > { %vm327_vm9 = vcmask 1031168   ;;  %vm334_vm10 = vcmask 916480   ;;  %vm435_vm11 = vcmask 293888   ;;  %vm514_vm12 = vcmask 132096  }
  0x5b   : > { %v369_v8 = vrot.slane %v297_v6, %v1373_v5  ;;  %v1379_v9 = vrot.slane %v296_v7, %v1373_v5  ;;  %v388_v12 = vrot.slane %v381_v10, %v1373_v5  ;;  %v314_v14 = vrot.slane %v307_v13, %v1373_v5  ;;  %515 = vst.msk [vmem:[#allocation2] sm:$0x3] %vm514_vm12, %v1193_v22  ;;  %v295_v13 = vld [vmem:[%s1571_s5] sm:$0x3] }
  0x5c   : > { %v362_v19 = vrot.slane %v355_v18, %v1373_v5  ;;  %vm516_vm13 = vcmask 1042312   ;;  %vm517_vm14 = vcmask 11266   ;;  %v504_v10 = vsub.s32 0, %v1370_v3 }
  0x5d   : > { %390 = vrot.lane.b32.xlu0 %v369_v8, %s1188_s1  ;;  %336 = vrot.lane.b32.xlu1 %v1379_v9, %s1189_s27  ;;  %v389_v11 = vcombine.high %v369_v8, %v369_v8  ;;  %v1390_v15 = vcombine.high %v1379_v9, %v1379_v9  ;;  %v322_v16 = vcombine.low %v1379_v9, %v1379_v9  ;;  %vm518_vm15 = vmor %vm517_vm14, %vm516_vm13  ;;  %vm538_vm12 = vcmask 1041544  }
  0x5e   : > { %v315_v17 = vcombine.high %v314_v14, %v314_v14  ;;  %v370_v20 = vcombine.low %v362_v19, %v362_v19  ;;  %v371_v21 = vcombine.low %v369_v8, %v369_v8  ;;  %v329_v24 = vcombine.low %v314_v14, %v314_v14  ;;  %519 = vst.msk [vmem:[#allocation2 + $0x2] sm:$0xf] %vm518_vm15, %v1193_v22 }
  0x5f   : > { %vm539_vm13 = vcmask 920578   ;;  %vm535_vm14 = vcmask 138240  }
  0x60   : > { %vm540_vm15 = vmor %vm539_vm13, %vm538_vm12  ;;  %vm749_vm12 = vcmask 31744  }
  0x61   : > { %392 = vrot.lane.b32.xlu0 %v389_v11, %s1188_s1  ;;  %394 = vrot.lane.b32.xlu1 %v388_v12, %s1188_s1  ;;  %v508_v11 = vsub.s32 1, %v1370_v3 }
  0x63   : > { %v509_v18 = vrot.slane %v295_v13, %v508_v11 }
  0x65   : > { %342 = vrot.lane.b32.xlu1 %v314_v14, %s1190_s29  ;;  %338 = vrot.lane.b32.xlu0 %v1390_v15, %s1189_s27 }
  0x69   : > { %348 = vrot.lane.b32.xlu1 %v322_v16, %s1191_s10  ;;  %344 = vrot.lane.b32.xlu0 %v315_v17, %s1190_s29 }
  0x6d   : > { %374 = vrot.lane.b32.xlu1 %v362_v19, %s1192_s13  ;;  %350 = vrot.lane.b32.xlu0 %v1379_v9, %s1191_s10 }
  0x71   : > { %372 = vrot.lane.b32.xlu1 %v370_v20, %s1192_s13  ;;  %376 = vrot.lane.b32.xlu0 %v371_v21, %s1192_s13 }
  0x75   : > { %318 = vrot.lane.b32.xlu1 %v315_v17, %s1194_s15  ;;  %316 = vrot.lane.b32.xlu0 %v314_v14, %s1194_s15  ;;  %v505_v17 = vrot.slane %v295_v13, %v504_v10 }
  0x79   : > { %325 = vrot.lane.b32.xlu1 %v1379_v9, %s1196_s16  ;;  %323 = vrot.lane.b32.xlu0 %v322_v16, %s1196_s16 }
  0x7d   : > { %332 = vrot.lane.b32.xlu1 %v314_v14, %s1197_s12  ;;  %330 = vrot.lane.b32.xlu0 %v329_v24, %s1197_s12 }
  0x81   : > { %488 = vperm.xlu0 %1022, %v1418_v25   ;;  %494 = vperm.xlu1 %1023, %v1418_v25  }
  0xcf   : > { %v391_v26 = vpop.permute.xlu0 %390  ;;  %v337_v27 = vpop.permute.xlu1 %336 }
  0xd3   : > { %v393_v28 = vpop.permute.xlu0 %392  ;;  %v395_v29 = vpop.permute.xlu1 %394 }
  0xd4   : > { %v398_v30 = vsel %vm396_vm0, %v393_v28, %v395_v29  ;;  %v397_v31 = vsel %vm396_vm0, %v391_v26, %v393_v28 }
  0xd5   : > { %923 = vmatprep.subr.msk.bf16.mxu0 %vm399_vm1, %v398_v30  ;;  %v440_v32 = vsel %vm399_vm1, %v397_v31, 0 }
  0xd6   : > { %456 = vmatpush1.bf16.msra.mxu0 %v440_v32 }
  0xd7   : > { %v343_v33 = vpop.permute.xlu1 %342  ;;  %v339_v34 = vpop.permute.xlu0 %338 }
  0xd8   : > { %v341_v41 = vsel %vm340_vm4, %v337_v27, %v339_v34 }
  0xdb   : > { %v349_v35 = vpop.permute.xlu1 %348  ;;  %v345_v36 = vpop.permute.xlu0 %344 }
  0xdc   : > { %v347_v39 = vsel %vm346_vm2, %v343_v33, %v345_v36  ;;  %v423_v43 = vsel %vm399_vm1, %v339_v34, %v345_v36 }
  0xdd   : > { %v420_v42 = vsel %vm399_vm1, %v341_v41, %v347_v39 }
  0xdf   : > { %v375_v37 = vpop.permute.xlu1 %374  ;;  %v351_v38 = vpop.permute.xlu0 %350 }
  0xe0   : > { %v353_v40 = vsel %vm352_vm3, %v349_v35, %v351_v38  ;;  %v427_v46 = vsel %vm406_vm5, %v423_v43, %v351_v38 }
  0xe1   : > { %v425_v49 = vsel %vm406_vm5, %v420_v42, %v353_v40 }
  0xe3   : > { %v373_v44 = vpop.permute.xlu1 %372  ;;  %v377_v45 = vpop.permute.xlu0 %376 }
  0xe4   : > { %v379_v47 = vsel %vm378_vm6, %v373_v44, %v375_v37  ;;  %v380_v48 = vsel %vm378_vm6, %v375_v37, %v377_v45  ;;  %v928_v44 = vld.sshfl [vmem:[%s1360_s9] sm:$0x33 pattern:$0x76325410] }
  0xe5   : > { %v432_v50 = vsel %vm411_vm7, %v427_v46, %v380_v48  ;;  %v429_v51 = vsel %vm411_vm7, %v425_v49, %v379_v47  ;;  %v748_v45 = vcombine.high %v928_v44, %v928_v44  ;;  %v754_v46 = vsel %vm399_vm1, %v928_v44, 0 }
  0xe6   : > { %457 = vmatprep.subr.bf16.mxu0 %v432_v50  ;;  %v1199_v49 = vmov 3   ;;  %v1200_v50 = vmov 2  }
  0xe7   : > { %v319_v52 = vpop.permute.xlu1 %318  ;;  %458 = vmatpush1.bf16.msra.mxu0 %v429_v51  ;;  %v317_v53 = vpop.permute.xlu0 %316  ;;  %1025 = vset.pattern.permute.xlu1 %v1199_v49 }
  0xe8   : > { %v321_v56 = vsel %vm320_vm8, %v317_v53, %v319_v52  ;;  %v405_v58 = vsel %vm399_vm1, %v1390_v15, %v319_v52  ;;  %1024 = vset.pattern.permute.xlu0 %v1200_v50  ;;  %v1201_v52 = vmov 4  }
  0xe9   : > { %v402_v59 = vsel %vm399_vm1, %v1379_v9, %v321_v56 }
  0xeb   : > { %v326_v54 = vpop.permute.xlu1 %325  ;;  %v324_v55 = vpop.permute.xlu0 %323 }
  0xec   : > { %v328_v57 = vsel %vm327_vm9, %v324_v55, %v326_v54  ;;  %v410_v60 = vsel %vm406_vm5, %v405_v58, %v326_v54 }
  0xed   : > { %v408_v1 = vsel %vm406_vm5, %v402_v59, %v328_v57 }
  0xef   : > { %v333_v61 = vpop.permute.xlu1 %332  ;;  %v331_v62 = vpop.permute.xlu0 %330 }
  0xf0   : > { %v335_v63 = vsel %vm334_vm10, %v331_v62, %v333_v61  ;;  %v416_v0 = vsel %vm411_vm7, %v410_v60, %v333_v61 }
  0xf1   : > { %459 = vmatprep.subr.bf16.mxu0 %v416_v0  ;;  %v413_v2 = vsel %vm411_vm7, %v408_v1, %v335_v63 }
  0xf2   : > { %460 = vmatpush1.bf16.msra.mxu0 %v413_v2 }
  0xf3   : > { %929 = vmatprep.subr.msk.bf16.mxu0 %vm399_vm1, %v748_v45 }
  0xf5   : > { %924 = vmatmul.mubr.msk.bf16.vlgmr.msra.gmra.mxu0 %vm435_vm11, %v434_v4 }
  0xf6   : > { %791 = vmatprep.mubr.bf16.mxu0 %v1193_v22  ;;  %774 = vmatpush1.bf16.msra.mxu0 %v754_v46 }
  0xfc   : > { %v489_v6 = vpop.permute.xlu0 %488  ;;  %v495_v8 = vpop.permute.xlu1 %494 }
 0x1b5   : > { %v479_v7 = vpop.f32.mrf.mxu0 }
 0x1b6   : > { %v491_v9 = vmul.f32 %v489_v6, %v479_v7 }
 0x1b7   : > { %v481_v12 = vpop.f32.mrf.mxu0 }
 0x1b8   : > { %v492_v14 = vmul.f32 %v489_v6, %v481_v12  ;;  %v497_v15 = vadd.f32 %v495_v8, %v491_v9 }
 0x1b9   : > { %v483_v16 = vpop.f32.mrf.mxu0 }
 0x1ba   : > { %v498_v19 = vadd.f32 %v495_v8, %v492_v14  ;;  %v499_v20 = vmax.f32 %v497_v15, 0.0 }
 0x1bb   : > { %v484_v21 = vpop.f32.mrf.mxu0 }
 0x1bc   : > { %v500_v22 = vmax.f32 %v498_v19, 0.0  ;;  %v512_v23 = vmul.f32 %v505_v17, %v499_v20 }
 0x1be   : > { %v513_v24 = vmul.f32 %v509_v18, %v500_v22 }
 0x1c0   : > { %v925_v26 = vpack.c.bf16 %v513_v24, %v512_v23 }
 0x1c2   : > { %v531_v27 = vrot.slane %v925_v26, %v1373_v5 }
 0x1c4   : > { %532 = vrot.lane.b32.xlu1 %v531_v27, %s1198_s18 }
 0x236   : > { %v533_v3 = vpop.permute.xlu1 %532 }
 0x237   : > { %v534_v28 = vrot.slane %v533_v3, 6 }
 0x239   : > { %v536_v29 = vsel %vm535_vm14, %v534_v28, %v533_v3 }
 0x23a   : > { %541 = vst.msk [vmem:[#allocation2] sm:$0xf] %vm540_vm15, %v536_v29 }
 0x241   : > { %v543_v30 = vld [vmem:[#allocation2] sm:$0x3f] }
 0x242   : > { %v542_v31 = vld [vmem:[#allocation2] sm:$0xf]  ;;  %v609_v32 = vrot.slane %v543_v30, %v1373_v5  ;;  %v620_v35 = vcombine.high %v543_v30, %v543_v30  ;;  %v595_v41 = vcombine.low %v543_v30, %v543_v30 }
 0x243   : > { %v1460_v33 = vrot.slane %v542_v31, %v1373_v5  ;;  %v553_v36 = vcombine.low %v542_v31, %v542_v31  ;;  %v669_v31 = vld [vmem:[%s1568_s2] sm:$0x3] }
 0x244   : > { %629 = vrot.lane.b32.xlu0 %v609_v32, %s1188_s1  ;;  %v628_v34 = vcombine.high %v609_v32, %v609_v32  ;;  %v627_v37 = vrot.slane %v620_v35, %v1373_v5  ;;  %v602_v42 = vrot.slane %v595_v41, %v1373_v5  ;;  %v611_v43 = vcombine.low %v609_v32, %v609_v32 }
 0x245   : > { %579 = vrot.lane.b32.xlu1 %v1460_v33, %s1189_s27  ;;  %v560_v38 = vrot.slane %v553_v36, %v1373_v5  ;;  %v567_v39 = vcombine.low %v1460_v33, %v1460_v33  ;;  %v1476_v40 = vcombine.high %v1460_v33, %v1460_v33  ;;  %v734_v5 = vld [vmem:[#allocation8] sm:$0x3] }
 0x246   : > { %v610_v47 = vcombine.low %v602_v42, %v602_v42  ;;  %930 = vmatmul.mubr.msk.bf16.vlgmr.msra.gmra.mxu0 %vm749_vm12, %v734_v5 }
 0x247   : > { %v561_v48 = vcombine.high %v560_v38, %v560_v38  ;;  %v573_v51 = vcombine.low %v560_v38, %v560_v38 }
 0x248   : > { %591 = vrot.lane.b32.xlu0 %v1460_v33, %s1191_s10 }
 0x249   : > { %631 = vrot.lane.b32.xlu1 %v628_v34, %s1188_s1 }
 0x24c   : > { %633 = vrot.lane.b32.xlu0 %v627_v37, %s1188_s1  ;;  %s922_s1 = sshll.u32 %s1356_s17, 3 }
 0x24d   : > { %584 = vrot.lane.b32.xlu1 %v560_v38, %s1190_s29 }
 0x250   : > { %581 = vrot.lane.b32.xlu0 %v1476_v40, %s1189_s27  ;;  %s936_s27 = sshll.u32 %s1259_s25, 7  ;;  %s1202_s25 = smov [#allocation9]  }
 0x251   : > { %589 = vrot.lane.b32.xlu1 %v567_v39, %s1191_s10  ;;  %s1118_s7 = sshll.u32 %s1202_s25, 4  ;;  %s1119_s7 = int_to_ptr.vmem [resolvable:$false] %s1118_s7 }
 0x252   : > { %s1120_s30 = scalar_lea.vmem %s1119_s7, 256 }
 0x254   : > { %616 = vrot.lane.b32.xlu0 %v611_v43, %s1192_s13 }
 0x255   : > { %614 = vrot.lane.b32.xlu1 %v602_v42, %s1192_s13 }
 0x258   : > { %562 = vrot.lane.b32.xlu0 %v560_v38, %s1194_s15 }
 0x259   : > { %570 = vrot.lane.b32.xlu1 %v1460_v33, %s1196_s16 }
 0x25c   : > { %586 = vrot.lane.b32.xlu0 %v561_v48, %s1190_s29  ;;  %s292_s29 = scalar_lea.vmem [#allocation9], %s922_s1 }
 0x25d   : > { %612 = vrot.lane.b32.xlu1 %v610_v47, %s1192_s13  ;;  %s824_s10 = sshll.u32 %s292_s29, 4  ;;  %s825_s10 = int_to_ptr.vmem [resolvable:$true] %s824_s10 }
 0x25e   : > { %s1114_s8 = scalar_lea.vmem %s825_s10, 128  ;;  %p1121_p4 = scmp.lt.s32.totalorder %s825_s10, %s1119_s7 }
 0x25f   : > { %p1115_p13 = scmp.ne.s32.totalorder %s825_s10, %s1114_s8  ;;  %p1122_p6 = scmp.lt.s32.totalorder %s1120_s30, %s1114_s8 }
 0x260   : > { %568 = vrot.lane.b32.xlu0 %v567_v39, %s1196_s16  ;;  %s822_s16 = scalar_lea.hbm %s1572_s6, %s936_s27 }
 0x261   : > { %564 = vrot.lane.b32.xlu1 %v561_v48, %s1194_s15  ;;  %p1116_p1 = pnand %p1115_p13, %p1590_p0  ;;  %p1123_p8 = por %p1122_p6, %p1121_p4 }
 0x263   : > { %p1117_p2 = pneg %p1116_p1 }
 0x264   : > { %574 = vrot.lane.b32.xlu0 %v573_v51, %s1197_s12 }
 0x265   : > { %576 = vrot.lane.b32.xlu1 %v560_v38, %s1197_s12  ;;  %s810_s12 = scalar_lea.sflag [#allocation5], %s1356_s17  ;;  %p1124_p12 = pnand %p1123_p8, %p1117_p2 }
 0x268   : > { %721 = vperm.xlu0 %1024, %v1418_v25  }
 0x269   : > { %727 = vperm.xlu1 %1025, %v1418_v25  }
 0x26c   : > { %1027 = vset.pattern.permute.xlu0 %v1201_v52 }
 0x26d   : > { %1026 = vset.pattern.permute.xlu1 %v1201_v52 }
 0x26e   : > { %737 = vperm.xlu1 %1026, %v1418_v25  }
 0x2b6   : > { %v630_v53 = vpop.permute.xlu0 %629 }
 0x2b7   : > { %v580_v54 = vpop.permute.xlu1 %579 }
 0x2ba   : > { %v592_v55 = vpop.permute.xlu0 %591 }
 0x2bb   : > { %v632_v56 = vpop.permute.xlu1 %631 }
 0x2bc   : > { %v635_v57 = vsel %vm396_vm0, %v630_v53, %v632_v56 }
 0x2bd   : > { %v674_v61 = vsel %vm399_vm1, %v635_v57, 0 }
 0x2be   : > { %v634_v58 = vpop.permute.xlu0 %633 }
 0x2bf   : > { %v585_v59 = vpop.permute.xlu1 %584  ;;  %v636_v60 = vsel %vm396_vm0, %v632_v56, %v634_v58  ;;  %vm806_vm0 = vcmask 785412  }
 0x2c0   : > { %926 = vmatprep.subr.msk.bf16.mxu1 %vm399_vm1, %v636_v60 }
 0x2c1   : > { %690 = vmatpush1.bf16.msra.mxu1 %v674_v61 }
 0x2c2   : > { %v582_v63 = vpop.permute.xlu0 %581 }
 0x2c3   : > { %v590_v62 = vpop.permute.xlu1 %589  ;;  %v583_v7 = vsel %vm340_vm4, %v580_v54, %v582_v63 }
 0x2c4   : > { %v593_v10 = vsel %vm352_vm3, %v590_v62, %v592_v55 }
 0x2c6   : > { %v617_v1 = vpop.permute.xlu0 %616 }
 0x2c7   : > { %v615_v0 = vpop.permute.xlu1 %614 }
 0x2c8   : > { %v619_v11 = vsel %vm378_vm6, %v615_v0, %v617_v1 }
 0x2ca   : > { %v563_v2 = vpop.permute.xlu0 %562 }
 0x2cb   : > { %v571_v25 = vpop.permute.xlu1 %570 }
 0x2ce   : > { %v587_v6 = vpop.permute.xlu0 %586 }
 0x2cf   : > { %v613_v4 = vpop.permute.xlu1 %612  ;;  %v588_v8 = vsel %vm346_vm2, %v585_v59, %v587_v6  ;;  %v658_v9 = vsel %vm399_vm1, %v582_v63, %v587_v6 }
 0x2d0   : > { %v655_v12 = vsel %vm399_vm1, %v583_v7, %v588_v8  ;;  %v662_v13 = vsel %vm406_vm5, %v658_v9, %v592_v55  ;;  %v618_v14 = vsel %vm378_vm6, %v613_v4, %v615_v0 }
 0x2d1   : > { %v667_v15 = vsel %vm411_vm7, %v662_v13, %v619_v11  ;;  %v660_v16 = vsel %vm406_vm5, %v655_v12, %v593_v10 }
 0x2d2   : > { %691 = vmatprep.subr.bf16.mxu1 %v667_v15  ;;  %v569_v18 = vpop.permute.xlu0 %568  ;;  %v664_v19 = vsel %vm411_vm7, %v660_v16, %v618_v14 }
 0x2d3   : > { %v565_v17 = vpop.permute.xlu1 %564  ;;  %692 = vmatpush1.bf16.msra.mxu1 %v664_v19  ;;  %v572_v23 = vsel %vm327_vm9, %v569_v18, %v571_v25 }
 0x2d4   : > { %v566_v20 = vsel %vm320_vm8, %v563_v2, %v565_v17  ;;  %v642_v21 = vsel %vm399_vm1, %v1476_v40, %v565_v17 }
 0x2d5   : > { %v639_v22 = vsel %vm399_vm1, %v1460_v33, %v566_v20  ;;  %v646_v27 = vsel %vm406_vm5, %v642_v21, %v571_v25  ;;  %vm807_vm1 = vmor %vm806_vm0, %vm406_vm5 }
 0x2d6   : > { %v575_v26 = vpop.permute.xlu0 %574  ;;  %v644_v29 = vsel %vm406_vm5, %v639_v22, %v572_v23 }
 0x2d7   : > { %v577_v24 = vpop.permute.xlu1 %576 }
 0x2d8   : > { %v578_v3 = vsel %vm334_vm10, %v575_v26, %v577_v24  ;;  %v651_v28 = vsel %vm411_vm7, %v646_v27, %v577_v24 }
 0x2d9   : > { %693 = vmatprep.subr.bf16.mxu1 %v651_v28  ;;  %v648_v30 = vsel %vm411_vm7, %v644_v29, %v578_v3 }
 0x2da   : > { %694 = vmatpush1.bf16.msra.mxu1 %v648_v30 }
 0x2dd   : > { %927 = vmatmul.mubr.msk.bf16.vlgmr.msra.gmra.mxu1 %vm435_vm11, %v669_v31 }
 0x2e3   : > { %v722_v37 = vpop.permute.xlu0 %721 }
 0x2e4   : > { %v728_v36 = vpop.permute.xlu1 %727 }
 0x2e9   : > { %v738_v41 = vpop.permute.xlu1 %737 }
 0x306   : > { %v793_v32 = vpop.f32.mrf.mxu0 }
 0x307   : > { %v794_v47 = vadd.f32 %v793_v32, %v738_v41 }
 0x308   : > { %v795_v33 = vpop.f32.mrf.mxu0 }
 0x309   : > { %v796_v49 = vadd.f32 %v795_v33, %v738_v41 }
 0x30a   : > { %v797_v34 = vpop.f32.mrf.mxu0 }
 0x30c   : > { %v798_v35 = vpop.f32.mrf.mxu0 }
 0x39d   : > { %v713_v38 = vpop.f32.mrf.mxu1 }
 0x39e   : > { %v724_v39 = vmul.f32 %v722_v37, %v713_v38 }
 0x39f   : > { %v715_v40 = vpop.f32.mrf.mxu1 }
 0x3a0   : > { %v730_v42 = vadd.f32 %v728_v36, %v724_v39  ;;  %v725_v43 = vmul.f32 %v722_v37, %v715_v40 }
 0x3a1   : > { %v717_v44 = vpop.f32.mrf.mxu1 }
 0x3a2   : > { %v732_v45 = vmax.f32 %v730_v42, 0.0  ;;  %v731_v46 = vadd.f32 %v728_v36, %v725_v43 }
 0x3a3   : > { %v718_v48 = vpop.f32.mrf.mxu1 }
 0x3a4   : > { %v733_v5 = vmax.f32 %v731_v46, 0.0  ;;  %v800_v50 = vadd.f32 %v794_v47, %v732_v45 }
 0x3a6   : > { %v801_v51 = vadd.f32 %v796_v49, %v733_v5 }
 0x3a8   : > { %v804_v52 = vcombine.low %v800_v50, %v801_v51 }
 0x3aa   : > { %808 = vst.msk [vmem:[%s292_s29] sm:$0xff] %vm807_vm1, %v804_v52 }
 0x3ab   : > { %1127 = shalt.err (!%p1124_p12)
}
 0x3ac   : > { %s1128_s14 = scalar_lea.hbm %s822_s16, 128  ;;  %s1132_s19 = scalar_lea.hbm %s1572_s6, 256 }
 0x3ad   : > { %p1129_p11 = scmp.ne.s32.totalorder %s822_s16, %s1128_s14  ;;  %p1133_p5 = scmp.lt.s32.totalorder %s822_s16, %s1572_s6 }
 0x3ae   : > { %p1134_p9 = scmp.lt.s32.totalorder %s1132_s19, %s1128_s14 }
 0x3af   : > { %p1130_p7 = pnand %p1129_p11, %p1590_p0 }
 0x3b0   : > { %p1135_p3 = por %p1134_p9, %p1133_p5 }
 0x3b1   : > { %p1131_p10 = pneg %p1130_p7 }
 0x3b3   : > { %p1136_p13 = pnand %p1135_p3, %p1131_p10 }
 0x3b5   : > { %1139 = shalt.err (!%p1136_p13)
}
 0x3b6   : > { %950 = dma.vmem_to_hbm [thread:$0]  (%p1590_p0), %s825_s10, 128, %s822_s16, %s810_s12  }
 0x3b7 PF: > { %s836_s27 = sand.u32 1, %s1170_s21   ;;  %p1591_p1 = scmp.ne.s32.totalorder %s1579_s28, 0 }
 0x3b8   : > { %p1592_p2 = scmp.ge.s32.totalorder %s1182_s24, 2  ;;  %s837_s29 = scalar_lea.sflag [#allocation5], %s836_s27 }
 0x3ba   : > { %p964_p4 = pnand %p1592_p2, %p1591_p1 }
 0x3bc   : > { %p965_p6 = pneg %p964_p4 }
 0x3be   : > { %1165 = dma.done.wait (%p965_p6), %s837_s29, 128  }
 0x3bf   : > { %1167 = vsyncadd (%p965_p6), %s837_s29, 4294967168  ;;  %p20_p8 = scmp.ge.s32.totalorder %s1292_s11, 4   ;;  %s1593_s21 = smov %s1174_s22 }
 0x3c0   : > { %s1594_s22 = smov %s1178_s23  ;;  %s1595_s23 = smov %s1319_s20 }
 0x3c1   : > { %s1596_s24 = smov %s1292_s11  ;;  %22 = sbr.rel (!%p20_p8) target bundleno = 8 (0x8), region = 97 }
 0x3c6   :  { %842 = vsyncpa [#allocation4], 1 }
 0x3c7   :  { %844 = vsyncpa [#allocation4 + $0x1], 1 }
 0x3c8   :  { %845 = vsyncpa [#allocation7], 1 }
 0x3c9   :  { %846 = vsyncpa [#allocation5], 1 }
 0x3ca   :  { %848 = vsyncpa [#allocation5 + $0x1], 1 }

</bundles_post_ra>
